<compile_context>
chip_gen: v5e
topology: v5e:2x2
jax: 0.10.0
libtpu: 0.0.40
codegen_flags: <defaults>
</compile_context>

<pallas_src>
import functools

import jax
import jax.numpy as jnp
from jax.experimental import pallas as pl
from jax.experimental.pallas import tpu as pltpu


def _round_up(x, m):
    return ((x + m - 1) // m) * m


def _round_down(x, m):
    return (x // m) * m


def _tpu_vmem_and_cores():
    """Best-effort per-TensorCore VMEM capacity and TC-per-chip count."""
    phys_vmem = 64 << 20          # conservative default (v7x per-TC VMEM)
    num_tc = 1                    # v5e / v6e: single TensorCore per chip
    try:
        phys_vmem = int(pltpu.get_tpu_info().vmem_capacity_bytes)
    except Exception:
        pass
    try:
        kind = jax.devices()[0].device_kind.lower()
        if "v7" in kind:
            num_tc = 2
    except Exception:
        pass
    return phys_vmem, num_tc


def _rmsnorm_kernel(x_ref, w_ref, o_ref, *, eps):
    # Weight is tiny, pre-cast to the output dtype in the wrapper; hoisted.
    w = w_ref[...]                                           # (1, H)
    x = x_ref[...].astype(jnp.float32)                       # (TM, H) fp32
    variance = jnp.mean(x * x, axis=-1, keepdims=True)       # (TM, 1) fp32
    normed = x * jax.lax.rsqrt(variance + eps)               # fp32
    # Match PyTorch exactly: cast back to the input dtype, THEN multiply by
    # weight (result dtype follows normal promotion of weight * x).
    normed_in = normed.astype(x_ref.dtype)
    o_ref[...] = (w * normed_in).astype(o_ref.dtype)


def chameleon_rmsnorm(hidden_states, weight, eps=1e-6, *, block_rows=None):
    """RMSNorm over the last axis of `hidden_states`, scaled by `weight`."""
    orig_shape = hidden_states.shape
    hidden_size = orig_shape[-1]
    assert weight.shape == (hidden_size,)

    # Output dtype matches PyTorch promotion: weight * hidden.to(input_dtype)
    out_dtype = jnp.promote_types(hidden_states.dtype, weight.dtype)

    x2d = hidden_states.reshape(-1, hidden_size)
    rows = x2d.shape[0]
    if rows == 0:
        return jnp.zeros(orig_shape, dtype=out_dtype)

    in_bytes = jnp.dtype(hidden_states.dtype).itemsize
    out_bytes = jnp.dtype(out_dtype).itemsize

    # Per-chip scoped-VMEM ceiling: ~3/4 of physical VMEM per TensorCore
    # (48 MiB on v7x, 96 MiB on v5e/v6e), with a small headroom taken off
    # the tile budget for Mosaic-internal scratch.
    phys_vmem, num_tc = _tpu_vmem_and_cores()
    vmem_limit_cap = min((phys_vmem * 3) // 4, 96 << 20)
    tile_budget = vmem_limit_cap - (4 << 20)

    # Per-row VMEM cost: double-buffered input (2*in) + double-buffered
    # output (2*out) + ~2 live fp32 intermediates (x_f32 and normed) = +8 B.
    per_row_vmem = hidden_size * (2 * in_bytes + 2 * out_bytes + 8)
    tm = max(8, int(tile_budget // per_row_vmem))
    if block_rows is not None:
        # Caller cap can only shrink TM; it can never push the tile past the
        # scoped-VMEM limit.
        tm = min(tm, max(8, int(block_rows)))

    # Multi-TensorCore chips only (v7x): give every core work and keep the
    # step count a multiple of the core count (even) so no core straggles.
    if num_tc > 1 and rows > 8:
        steps = pl.cdiv(rows, min(tm, rows))
        steps = _round_up(max(steps, num_tc), num_tc)
        tm = min(tm, max(8, _round_up(pl.cdiv(rows, steps), 8)))

    if tm >= rows:
        tm = rows                     # single full block; always layout-legal
    else:
        tm = max(8, _round_down(tm, 8))

    grid = pl.cdiv(rows, tm)

    # Scoped-VMEM limit sized to the actual tile footprint, capped per chip.
    tile_bytes = tm * per_row_vmem
    vmem_limit = int(min(max(tile_bytes + (2 << 20), 16 << 20), vmem_limit_cap))

    # Pre-cast the weight once in the wrapper (tiny, outside the grid loop).
    w2d = weight.astype(out_dtype).reshape(1, hidden_size)

    out2d = pl.pallas_call(
        functools.partial(_rmsnorm_kernel, eps=eps),
        out_shape=jax.ShapeDtypeStruct((rows, hidden_size), out_dtype),
        grid_spec=pltpu.PrefetchScalarGridSpec(
            num_scalar_prefetch=0,
            grid=(grid,),
            in_specs=[
                pl.BlockSpec((tm, hidden_size), lambda i: (i, 0)),
                pl.BlockSpec((1, hidden_size), lambda i: (0, 0)),
            ],
            out_specs=pl.BlockSpec((tm, hidden_size), lambda i: (i, 0)),
        ),
        compiler_params=pltpu.CompilerParams(
            dimension_semantics=("parallel",),
            vmem_limit_bytes=vmem_limit,
        ),
    )(x2d, w2d)

    return out2d.reshape(orig_shape)


def _reference(x, weight, eps):
    xf = x.astype(jnp.float32)
    var = jnp.mean(xf * xf, axis=-1, keepdims=True)
    return weight * (xf * jax.lax.rsqrt(var + eps)).astype(x.dtype)


if __name__ == "__main__":
    eps = 1e-6
    key = jax.random.PRNGKey(0)

    # Case 1: fp32 activations, rows divide the tile evenly.
    batch, seq, hidden = 2, 8, 128
    x = jax.random.normal(key, (batch, seq, hidden), dtype=jnp.float32)
    weight = jnp.ones((hidden,), dtype=jnp.float32)  # nn.Parameter(torch.ones)
    out = jax.block_until_ready(chameleon_rmsnorm(x, weight, eps))
    ref = _reference(x, weight, eps)
    assert out.shape == ref.shape and out.dtype == ref.dtype
    assert jnp.allclose(out, ref, atol=1e-5, rtol=1e-5)

    # Case 2: bf16 activations, fp32 weight, ragged row count (masked last
    # block through the cdiv grid, no padding copy).
    x2 = jax.random.normal(jax.random.PRNGKey(1), (3, 5, hidden),
                           dtype=jnp.bfloat16)
    w2 = jax.random.normal(jax.random.PRNGKey(2), (hidden,),
                           dtype=jnp.float32) * 0.1 + 1.0
    out2 = jax.block_until_ready(chameleon_rmsnorm(x2, w2, eps))
    ref2 = _reference(x2, w2, eps)
    assert out2.shape == ref2.shape and out2.dtype == ref2.dtype
    assert jnp.allclose(out2, ref2, atol=1e-2, rtol=1e-2)

    # Case 3: caller-supplied block_rows smaller than the row count (forces a
    # multi-step grid on every chip, exercising the accumol-free pipeline).
    x3 = jax.random.normal(jax.random.PRNGKey(3), (4, 8, hidden),
                           dtype=jnp.float32)
    out3 = jax.block_until_ready(chameleon_rmsnorm(x3, weight, eps,
                                                   block_rows=8))
    ref3 = _reference(x3, weight, eps)
    assert jnp.allclose(out3, ref3, atol=1e-5, rtol=1e-5)

    print("KERNEL_OK")
</pallas_src>

<mosaic_0001>
module attributes {stable_mosaic.version = 11 : i64} {
  func.func @_rmsnorm_kernel(%arg0: i32, %arg1: memref<16x128xf32, #tpu.memory_space<vmem>>, %arg2: memref<1x128xf32, #tpu.memory_space<vmem>>, %arg3: memref<16x128xf32, #tpu.memory_space<vmem>>) attributes {dimension_semantics = [#tpu.dimension_semantics<parallel>], iteration_bounds = array<i64: 1>, scalar_prefetch = 0 : i64, scratch_operands = 0 : i64, tpu.core_type = #tpu.core_type<tc>, window_params = [{transform_indices = @transform_0, window_bounds = array<i64: 16, 128>}, {pipeline_mode = #tpu.pipeline_mode<synchronous>, transform_indices = @transform_1, window_bounds = array<i64: 1, 128>}, {transform_indices = @transform_2, window_bounds = array<i64: 16, 128>}]} {
    %c0 = arith.constant 0 : index
    %c0_0 = arith.constant 0 : index
    %0 = vector.load %arg2[%c0, %c0_0] : memref<1x128xf32, #tpu.memory_space<vmem>>, vector<1x128xf32>
    %c0_1 = arith.constant 0 : index
    %c0_2 = arith.constant 0 : index
    %1 = vector.load %arg1[%c0_1, %c0_2] : memref<16x128xf32, #tpu.memory_space<vmem>>, vector<16x128xf32>
    %2 = arith.mulf %1, %1 : vector<16x128xf32>
    %cst = arith.constant dense<0.000000e+00> : vector<16xf32>
    %3 = vector.multi_reduction <add>, %2, %cst [1] : vector<16x128xf32> to vector<16xf32>
    %4 = vector.shape_cast %3 : vector<16xf32> to vector<16x1xf32>
    %cst_3 = arith.constant 1.280000e+02 : f32
    %5 = vector.broadcast %cst_3 : f32 to vector<16x1xf32>
    %6 = arith.divf %4, %5 : vector<16x1xf32>
    %cst_4 = arith.constant 9.99999997E-7 : f32
    %7 = vector.broadcast %cst_4 : f32 to vector<16x1xf32>
    %8 = arith.addf %6, %7 : vector<16x1xf32>
    %9 = math.rsqrt %8 : vector<16x1xf32>
    %10 = vector.broadcast %9 : vector<16x1xf32> to vector<16x128xf32>
    %11 = arith.mulf %1, %10 : vector<16x128xf32>
    %12 = vector.broadcast %0 : vector<1x128xf32> to vector<16x128xf32>
    %13 = arith.mulf %12, %11 : vector<16x128xf32>
    %c0_5 = arith.constant 0 : index
    %c0_6 = arith.constant 0 : index
    %14 = vector.load %arg3[%c0_5, %c0_6] : memref<16x128xf32, #tpu.memory_space<vmem>>, vector<16x128xf32>
    tpu.vector_store %arg3[%c0_5, %c0_6], %13 {strides = array<i32>} : memref<16x128xf32, #tpu.memory_space<vmem>>, vector<16x128xf32>,
    return
  }
  func.func @transform_0(%arg0: i32) -> (i32, i32) {
    %c0_i32 = arith.constant 0 : i32
    %c0_i32_0 = arith.constant 0 : i32
    return %arg0, %c0_i32 : i32, i32
  }
  func.func @transform_1(%arg0: i32) -> (i32, i32) {
    %c0_i32 = arith.constant 0 : i32
    %c0_i32_0 = arith.constant 0 : i32
    %c0_i32_1 = arith.constant 0 : i32
    return %c0_i32, %c0_i32_0 : i32, i32
  }
  func.func @transform_2(%arg0: i32) -> (i32, i32) {
    %c0_i32 = arith.constant 0 : i32
    %c0_i32_0 = arith.constant 0 : i32
    return %arg0, %c0_i32 : i32, i32
  }
}

</mosaic_0001>

<bundles_post_ra>
// kernel: tpu_custom_call.1
= control target key start
LH: loop header
LB: loop body
LE: loop exit
PB: predicated region body
PF: predicated region fallthrough
CT: control target
= control target key end

     0   :  { %7 = vsyncpa [#allocation3], 0  ;;  %s238_s0 = inlined_call_operand.hbm [shape: f32[16,128], index: 0, kind: input, shape index: {}]   ;;  %s239_s1 = inlined_call_operand.hbm [shape: f32[1,128], index: 1, kind: input, shape index: {}]   ;;  %s240_s2 = inlined_call_operand.hbm [shape: f32[16,128], index: 2, kind: output, shape index: {}]  }
   0x1   :  { %8 = vsyncpa [#allocation6], 0 }
   0x2   :  { %9 = vsyncpa [#allocation4], 0  ;;  %s14_s11 = sshll.u32 %s238_s0, 4  ;;  %s202_s12 = smov [#allocation2]   ;;  %s15_s11 = int_to_ptr.hbm [resolvable:$true] %s14_s11 }
   0x3   :  { %s16_s13 = sshll.u32 %s202_s12, 4  ;;  %s28_s16 = sshll.u32 %s239_s1, 4  ;;  %s17_s13 = int_to_ptr.vmem [resolvable:$true] %s16_s13  ;;  %s29_s16 = int_to_ptr.hbm [resolvable:$true] %s28_s16 }
   0x4   :  { %s203_s17 = smov 128   ;;  %s204_s18 = smov 8  }
   0x5   :  { %22 = dma.hbm_to_vmem [thread:$0]  %s15_s11, 256, %s17_s13, [#allocation3], %s203_s17, %s203_s17, %s204_s18  }
   0x6   :  { %s205_s19 = smov [#allocation5]  }
   0x7   :  { %s30_s20 = sshll.u32 %s205_s19, 4  ;;  %s31_s20 = int_to_ptr.vmem [resolvable:$true] %s30_s20 }
   0x8   :  { %33 = dma.hbm_to_vmem [thread:$0]  %s29_s16, 16, %s31_s20, [#allocation6]  }
   0x9   :  { %196 = dma.done.wait [#allocation3], 256  }
   0xa   :  { %197 = vsyncadd [#allocation3], 4294967040 }
   0xb   :  { %198 = dma.done.wait [#allocation6], 16  }
   0xc   :  { %199 = vsyncadd [#allocation6], 4294967280  ;;  %v43_v0 = vld [vmem:[#allocation2] sm:$0xff]  ;;  %v44_v2 = vld [vmem:[#allocation2 + $0x8] sm:$0xff]  ;;  %v206_v4 = vmov 128.0   ;;  %s207_s0 = smov [#allocation7]  }
   0xd   :  { %v45_v1 = vmul.f32 %v43_v0, %v43_v0  ;;  %v46_v3 = vmul.f32 %v44_v2, %v44_v2  ;;  %118 = vrcp.f32 %v206_v4  ;;  %v117_v25 = vld [vmem:[#allocation5] ss:$0 sm:$0xff]  ;;  %s95_s1 = sshll.u32 %s207_s0, 4  ;;  %s97_s23 = sshll.u32 %s240_s2, 4  ;;  %s96_s1 = int_to_ptr.vmem [resolvable:$true] %s95_s1  ;;  %s98_s23 = int_to_ptr.hbm [resolvable:$true] %s97_s23 }
   0xf   :  { %47 = vadd.xlane.f32.xlu0 %v45_v1 }
  0x13   :  { %v119_v5 = vpop.eup %118 }
  0x14   :  { %v52_v6 = vmul.f32 128.0, %v119_v5  ;;  %vm56_vm0 = vweird.f32 %v119_v5 }
  0x16   :  { %v53_v7 = vsub.f32 1.0, %v52_v6 }
  0x17   :  { %49 = vadd.xlane.f32.xlu0 %v46_v3 }
  0x18   :  { %v54_v8 = vmul.f32 %v119_v5, %v53_v7 }
  0x1a   :  { %v55_v9 = vadd.f32 %v119_v5, %v54_v8 }
  0x1c   :  { %v57_v10 = vsel %vm56_vm0, %v119_v5, %v55_v9 }
  0x82   :  { %v48_v11 = vpop.xlane.xlu0 %47 }
  0x83   :  { %v58_v12 = vmul.f32 %v57_v10, %v48_v11 }
  0x85   :  { %v60_v13 = vadd.f32 1e-06, %v58_v12 }
  0x87   :  { %120 = vrsqrt.f32 %v60_v13  ;;  %vm68_vm2 = vweird.f32 %v60_v13 }
  0x8a   :  { %v50_v14 = vpop.xlane.xlu0 %49 }
  0x8b   :  { %v59_v15 = vmul.f32 %v57_v10, %v50_v14 }
  0x8d   :  { %v121_v16 = vpop.eup %120  ;;  %v61_v17 = vadd.f32 1e-06, %v59_v15 }
  0x8e   :  { %v63_v18 = vmul.f32 %v121_v16, %v60_v13  ;;  %vm69_vm1 = vweird.f32 %v121_v16 }
  0x8f   :  { %122 = vrsqrt.f32 %v61_v17  ;;  %vm70_vm3 = vmor %vm68_vm2, %vm69_vm1  ;;  %vm78_vm5 = vweird.f32 %v61_v17 }
  0x90   :  { %v64_v19 = vmul.f32 %v121_v16, %v63_v18 }
  0x92   :  { %v65_v20 = vmul.f32 0.5, %v64_v19 }
  0x94   :  { %v66_v21 = vsub.f32 1.5, %v65_v20 }
  0x95   :  { %v123_v22 = vpop.eup %122 }
  0x96   :  { %v67_v23 = vmul.f32 %v121_v16, %v66_v21  ;;  %v73_v24 = vmul.f32 %v123_v22, %v61_v17  ;;  %vm79_vm4 = vweird.f32 %v123_v22 }
  0x97   :  { %vm80_vm6 = vmor %vm78_vm5, %vm79_vm4 }
  0x98   :  { %v71_v26 = vsel %vm70_vm3, %v121_v16, %v67_v23  ;;  %v74_v27 = vmul.f32 %v123_v22, %v73_v24 }
  0x99   :  { %v82_v28 = vmul.f32 %v71_v26, %v43_v0 }
  0x9a   :  { %v75_v29 = vmul.f32 0.5, %v74_v27 }
  0x9b   :  { %v87_v30 = vmul.f32 %v117_v25, %v82_v28 }
  0x9c   :  { %v76_v31 = vsub.f32 1.5, %v75_v29 }
  0x9d   :  { %89 = vst [vmem:[#allocation7] sm:$0xff] %v87_v30 }
  0x9e   :  { %v77_v32 = vmul.f32 %v123_v22, %v76_v31 }
  0xa0   :  { %v81_v33 = vsel %vm80_vm6, %v123_v22, %v77_v32 }
  0xa1   :  { %v83_v34 = vmul.f32 %v81_v33, %v44_v2 }
  0xa3   :  { %v88_v35 = vmul.f32 %v117_v25, %v83_v34 }
  0xa5   :  { %90 = vst [vmem:[#allocation7 + $0x8] sm:$0xff] %v88_v35 }
  0xa6   :  { %103 = dma.vmem_to_hbm [thread:$0]  %s96_s1, 256, %s98_s23, [#allocation4], %s203_s17, %s203_s17, %s204_s18  }
  0xa7   :  { %200 = dma.done.wait [#allocation4], 256  }
  0xa8   :  { %201 = vsyncadd [#allocation4], 4294967040 }
  0xa9   :  { %108 = vsyncpa [#allocation3], 1 }
  0xaa   :  { %109 = vsyncpa [#allocation6], 1 }
  0xab   :  { %110 = vsyncpa [#allocation4], 1 }

</bundles_post_ra>
